<compile_context>
chip_gen: v6e
topology: v6e:2x2x1
jax: 0.10.0
libtpu: 0.0.40
codegen_flags: <defaults>
</compile_context>

<pallas_src>
import functools

import jax
import jax.numpy as jnp
from jax import lax
from jax.experimental import pallas as pl
from jax.experimental.pallas import tpu as pltpu

_LANES = 128
_SUB = 8                      # rows per inner step == one f32 vreg
_LOSS_RATE = 9.0


def _corner_kernel(o_ref, t_ref, g_ref, bce_ref, correct_ref, pos_ref,
                   *, total_elems, unroll):
    # Block shapes: inputs (tile_rows, 128); outputs (1, 8, 128) per grid step.
    tile_rows = o_ref.shape[0]
    num_sub = tile_rows // _SUB

    # Global element index of each (row, lane) position within one 8x128 vreg.
    # (int32 is plenty for heatmap element counts.)
    sub_iota = (lax.broadcasted_iota(jnp.int32, (_SUB, _LANES), 0) * _LANES
                + lax.broadcasted_iota(jnp.int32, (_SUB, _LANES), 1))
    block_base = pl.program_id(0) * (tile_rows * _LANES)

    def body(s, carry):
        bce_acc, cor_acc, pos_acc = carry
        r0 = pl.multiple_of(s * _SUB, _SUB)
        o = o_ref[pl.ds(r0, _SUB), :]
        t = t_ref[pl.ds(r0, _SUB), :]
        g = g_ref[pl.ds(r0, _SUB), :]

        # Element-exact validity mask: covers both the ragged tail of the
        # flattened heatmap and the undefined rows the last grid block may
        # over-read (pad values are therefore irrelevant).
        valid = (block_base + s * (_SUB * _LANES) + sub_iota) < total_elems

        # recall pieces: positives and correct positives.
        tpos = valid & (t == 1.0)
        pos = jnp.where(tpos, 1.0, 0.0)
        cor = jnp.where(tpos & (o >= 0.5), 1.0, 0.0)

        # Weighted BCE with torch's log clamp at -100; negation folded into
        # the weight:  w * -(g*log(o) + (1-g)*log(1-o))
        #            == (-w) * (log(1-o) + g*(log(o) - log(1-o)))
        log_o = jnp.maximum(jnp.log(o), -100.0)
        log_1mo = jnp.maximum(jnp.log(1.0 - o), -100.0)
        neg_w = jnp.where(g > 0.5, -(_LOSS_RATE + 1.0), -1.0)
        bce = neg_w * (log_1mo + g * (log_o - log_1mo))
        bce = jnp.where(valid, bce, 0.0)

        return bce_acc + bce, cor_acc + cor, pos_acc + pos

    zeros = jnp.zeros((_SUB, _LANES), jnp.float32)
    bce_acc, cor_acc, pos_acc = lax.fori_loop(
        0, num_sub, body, (zeros, zeros, zeros), unroll=unroll)

    bce_ref[...] = bce_acc[None]
    correct_ref[...] = cor_acc[None]
    pos_ref[...] = pos_acc[None]


def _round_up(x, m):
    return ((x + m - 1) // m) * m


def _default_max_tile_rows():
    """Bigger tiles on v6e/v7x (more HBM BW, larger scoped VMEM); 2048 on v5e."""
    try:
        kind = jax.devices()[0].device_kind.lower()
    except Exception:
        return 2048
    if "v6" in kind or "v7" in kind or "7x" in kind:
        return 4096
    return 2048


def corner_criterion(outputs_s1, targets, gauss_targets, *, max_tile_rows=None):
    """Pallas forward of CornerCriterion: returns (loss_s1, recall_s1)."""
    assert outputs_s1.shape == targets.shape == gauss_targets.shape
    B = outputs_s1.shape[0]
    total = int(outputs_s1.size)
    if max_tile_rows is None:
        max_tile_rows = _default_max_tile_rows()
    max_tile_rows = max(_SUB, _round_up(max_tile_rows, _SUB))

    # Lane-dense slab: (rows, 128).  A pad copy is only made when the element
    # count is not a multiple of 128 or the slab has < 8 rows; large
    # lane-aligned heatmaps reshape for free (no extra HBM traffic).
    rows = max(pl.cdiv(total, _LANES), _SUB)
    pad = rows * _LANES - total

    def prep(x):
        x = jnp.reshape(x, (-1,)).astype(jnp.float32)
        if pad:
            x = jnp.pad(x, (0, pad))          # pad values masked in-kernel
        return jnp.reshape(x, (rows, _LANES))

    o2, t2, g2 = prep(outputs_s1), prep(targets), prep(gauss_targets)

    # Tile selection: multiple of 8, <= rows (so only the LAST grid block can
    # over-read, covered by the in-kernel mask), and >= 2 blocks whenever the
    # slab allows it so both v7x TensorCores get work.
    tile_rows = min(max_tile_rows, _round_up(pl.cdiv(rows, 2), _SUB))
    num_blocks = pl.cdiv(rows, tile_rows)
    num_sub = tile_rows // _SUB
    unroll = max(1, min(num_sub, 8))

    in_spec = pl.BlockSpec((tile_rows, _LANES), lambda i: (i, 0))
    out_spec = pl.BlockSpec((1, _SUB, _LANES), lambda i: (i, 0, 0))
    part = jax.ShapeDtypeStruct((num_blocks, _SUB, _LANES), jnp.float32)

    kernel = functools.partial(_corner_kernel, total_elems=total, unroll=unroll)

    bce_p, correct_p, pos_p = pl.pallas_call(
        kernel,
        grid=(num_blocks,),
        in_specs=[in_spec, in_spec, in_spec],
        out_specs=[out_spec, out_spec, out_spec],
        out_shape=[part, part, part],
        compiler_params=pltpu.CompilerParams(
            dimension_semantics=("parallel",)),
    )(o2, t2, g2)

    # loss_s1.sum(-1).sum(-1).mean()  ==  total_sum / B  for (B, H, W) input.
    loss_s1 = jnp.sum(bce_p) / jnp.float32(B)
    # recall = correct positives / number of positive target positions
    # (NaN if no positives -- matches the PyTorch module's behavior.)
    recall_s1 = jnp.sum(correct_p) / jnp.sum(pos_p)
    return loss_s1, recall_s1


def _reference(outputs_s1, targets, gauss_targets):
    pos = (targets == 1.0)
    preds = (outputs_s1 >= 0.5).astype(jnp.float32)
    correct = jnp.sum(jnp.where(pos, (preds == targets).astype(jnp.float32), 0.0))
    recall = correct / jnp.sum(pos.astype(jnp.float32))
    weight = (gauss_targets > 0.5).astype(jnp.float32) * _LOSS_RATE + 1.0
    log_o = jnp.maximum(jnp.log(outputs_s1), -100.0)
    log_1mo = jnp.maximum(jnp.log(1.0 - outputs_s1), -100.0)
    bce = weight * (-(gauss_targets * log_o + (1.0 - gauss_targets) * log_1mo))
    loss = jnp.mean(jnp.sum(bce, axis=(-1, -2)))
    return loss, recall


def _make_inputs(key, shape):
    k1, k2 = jax.random.split(key)
    outputs_s1 = jax.nn.sigmoid(jax.random.normal(k1, shape, jnp.float32))
    gauss_targets = jax.random.uniform(k2, shape, jnp.float32)
    targets = (gauss_targets > 0.7).astype(jnp.float32)
    return outputs_s1, targets, gauss_targets


if __name__ == "__main__":
    key = jax.random.PRNGKey(0)
    keys = jax.random.split(key, 3)

    cases = [
        ((2, 16, 16), keys[0]),   # tiny, lane-aligned but < 8 rows (pad path)
        ((3, 20, 24), keys[1]),   # ragged element count (pad + in-kernel mask)
        ((2, 64, 64), keys[2]),   # lane-aligned zero-copy path, 2 grid blocks
    ]
    for shape, k in cases:
        o, t, g = _make_inputs(k, shape)
        loss, recall = corner_criterion(o, t, g)
        jax.block_until_ready((loss, recall))
        ref_loss, ref_recall = _reference(o, t, g)
        assert jnp.allclose(loss, ref_loss, rtol=1e-4, atol=1e-3), \
            (shape, float(loss), float(ref_loss))
        assert jnp.allclose(recall, ref_recall, rtol=1e-5, atol=1e-5), \
            (shape, float(recall), float(ref_recall))

    print("KERNEL_OK")
</pallas_src>

<mosaic_0001>
module attributes {stable_mosaic.version = 11 : i64} {
  func.func @_corner_kernel(%arg0: i32, %arg1: memref<8x128xf32, #tpu.memory_space<vmem>>, %arg2: memref<8x128xf32, #tpu.memory_space<vmem>>, %arg3: memref<8x128xf32, #tpu.memory_space<vmem>>, %arg4: memref<1x8x128xf32, #tpu.memory_space<vmem>>, %arg5: memref<1x8x128xf32, #tpu.memory_space<vmem>>, %arg6: memref<1x8x128xf32, #tpu.memory_space<vmem>>) attributes {dimension_semantics = [#tpu.dimension_semantics<parallel>], iteration_bounds = array<i64: 1>, scalar_prefetch = 0 : i64, scratch_operands = 0 : i64, tpu.core_type = #tpu.core_type<tc>, window_params = [{transform_indices = @transform_0, window_bounds = array<i64: 8, 128>}, {transform_indices = @transform_1, window_bounds = array<i64: 8, 128>}, {transform_indices = @transform_2, window_bounds = array<i64: 8, 128>}, {transform_indices = @transform_3, window_bounds = array<i64: 1, 8, 128>}, {transform_indices = @transform_4, window_bounds = array<i64: 1, 8, 128>}, {transform_indices = @transform_5, window_bounds = array<i64: 1, 8, 128>}]} {
    %0 = tpu.iota {dimensions = array<i32: 0>} : vector<8x128xi32>
    %c128_i32 = arith.constant 128 : i32
    %1 = vector.broadcast %c128_i32 : i32 to vector<8x128xi32>
    %2 = arith.muli %0, %1 : vector<8x128xi32>
    %3 = tpu.iota {dimensions = array<i32: 1>} : vector<8x128xi32>
    %4 = arith.addi %2, %3 : vector<8x128xi32>
    %c1024_i32 = arith.constant 1024 : i32
    %5 = arith.muli %arg0, %c1024_i32 : i32
    %cst = arith.constant 0.000000e+00 : f32
    %6 = vector.broadcast %cst : f32 to vector<8x128xf32>
    %c0_i32 = arith.constant 0 : i32
    %c8_i32 = arith.constant 8 : i32
    %7 = arith.muli %c0_i32, %c8_i32 : i32
    %8 = tpu.assume_multiple %7, 8 : i32
    %9 = arith.index_cast %8 : i32 to index
    %c0 = arith.constant 0 : index
    %10 = vector.load %arg1[%9, %c0] : memref<8x128xf32, #tpu.memory_space<vmem>>, vector<8x128xf32>
    %11 = arith.index_cast %8 : i32 to index
    %c0_0 = arith.constant 0 : index
    %12 = vector.load %arg2[%11, %c0_0] : memref<8x128xf32, #tpu.memory_space<vmem>>, vector<8x128xf32>
    %13 = arith.index_cast %8 : i32 to index
    %c0_1 = arith.constant 0 : index
    %14 = vector.load %arg3[%13, %c0_1] : memref<8x128xf32, #tpu.memory_space<vmem>>, vector<8x128xf32>
    %c1024_i32_2 = arith.constant 1024 : i32
    %15 = arith.muli %c0_i32, %c1024_i32_2 : i32
    %16 = arith.addi %5, %15 : i32
    %17 = vector.broadcast %16 : i32 to vector<8x128xi32>
    %18 = arith.addi %17, %4 : vector<8x128xi32>
    %c512_i32 = arith.constant 512 : i32
    %19 = vector.broadcast %c512_i32 : i32 to vector<8x128xi32>
    %20 = arith.cmpi slt, %18, %19 : vector<8x128xi32>
    %cst_3 = arith.constant 1.000000e+00 : f32
    %21 = vector.broadcast %cst_3 : f32 to vector<8x128xf32>
    %22 = arith.cmpf oeq, %12, %21 : vector<8x128xf32>
    %23 = arith.andi %20, %22 : vector<8x128xi1>
    %cst_4 = arith.constant 1.000000e+00 : f32
    %cst_5 = arith.constant 0.000000e+00 : f32
    %24 = vector.broadcast %cst_4 : f32 to vector<8x128xf32>
    %25 = vector.broadcast %cst_5 : f32 to vector<8x128xf32>
    %26 = arith.select %23, %24, %25 : vector<8x128xi1>, vector<8x128xf32>
    %cst_6 = arith.constant 5.000000e-01 : f32
    %27 = vector.broadcast %cst_6 : f32 to vector<8x128xf32>
    %28 = arith.cmpf oge, %10, %27 : vector<8x128xf32>
    %29 = arith.andi %23, %28 : vector<8x128xi1>
    %cst_7 = arith.constant 1.000000e+00 : f32
    %cst_8 = arith.constant 0.000000e+00 : f32
    %30 = vector.broadcast %cst_7 : f32 to vector<8x128xf32>
    %31 = vector.broadcast %cst_8 : f32 to vector<8x128xf32>
    %32 = arith.select %29, %30, %31 : vector<8x128xi1>, vector<8x128xf32>
    %33 = math.log %10 : vector<8x128xf32>
    %cst_9 = arith.constant -1.000000e+02 : f32
    %34 = vector.broadcast %cst_9 : f32 to vector<8x128xf32>
    %35 = arith.maximumf %33, %34 : vector<8x128xf32>
    %cst_10 = arith.constant 1.000000e+00 : f32
    %36 = vector.broadcast %cst_10 : f32 to vector<8x128xf32>
    %37 = arith.subf %36, %10 : vector<8x128xf32>
    %38 = math.log %37 : vector<8x128xf32>
    %cst_11 = arith.constant -1.000000e+02 : f32
    %39 = vector.broadcast %cst_11 : f32 to vector<8x128xf32>
    %40 = arith.maximumf %38, %39 : vector<8x128xf32>
    %cst_12 = arith.constant 5.000000e-01 : f32
    %41 = vector.broadcast %cst_12 : f32 to vector<8x128xf32>
    %42 = arith.cmpf ogt, %14, %41 : vector<8x128xf32>
    %cst_13 = arith.constant -1.000000e+01 : f32
    %cst_14 = arith.constant -1.000000e+00 : f32
    %43 = vector.broadcast %cst_13 : f32 to vector<8x128xf32>
    %44 = vector.broadcast %cst_14 : f32 to vector<8x128xf32>
    %45 = arith.select %42, %43, %44 : vector<8x128xi1>, vector<8x128xf32>
    %46 = arith.subf %35, %40 : vector<8x128xf32>
    %47 = arith.mulf %14, %46 : vector<8x128xf32>
    %48 = arith.addf %40, %47 : vector<8x128xf32>
    %49 = arith.mulf %45, %48 : vector<8x128xf32>
    %cst_15 = arith.constant 0.000000e+00 : f32
    %50 = vector.broadcast %cst_15 : f32 to vector<8x128xf32>
    %51 = arith.select %20, %49, %50 : vector<8x128xi1>, vector<8x128xf32>
    %52 = arith.addf %6, %51 : vector<8x128xf32>
    %53 = arith.addf %6, %32 : vector<8x128xf32>
    %54 = arith.addf %6, %26 : vector<8x128xf32>
    %c1_i32 = arith.constant 1 : i32
    %55 = vector.shape_cast %52 : vector<8x128xf32> to vector<1x8x128xf32>
    %c0_16 = arith.constant 0 : index
    %c0_17 = arith.constant 0 : index
    %c0_18 = arith.constant 0 : index
    %56 = vector.load %arg4[%c0_16, %c0_17, %c0_18] : memref<1x8x128xf32, #tpu.memory_space<vmem>>, vector<1x8x128xf32>
    tpu.vector_store %arg4[%c0_16, %c0_17, %c0_18], %55 {strides = array<i32>} : memref<1x8x128xf32, #tpu.memory_space<vmem>>, vector<1x8x128xf32>,
    %57 = vector.shape_cast %53 : vector<8x128xf32> to vector<1x8x128xf32>
    %c0_19 = arith.constant 0 : index
    %c0_20 = arith.constant 0 : index
    %c0_21 = arith.constant 0 : index
    %58 = vector.load %arg5[%c0_19, %c0_20, %c0_21] : memref<1x8x128xf32, #tpu.memory_space<vmem>>, vector<1x8x128xf32>
    tpu.vector_store %arg5[%c0_19, %c0_20, %c0_21], %57 {strides = array<i32>} : memref<1x8x128xf32, #tpu.memory_space<vmem>>, vector<1x8x128xf32>,
    %59 = vector.shape_cast %54 : vector<8x128xf32> to vector<1x8x128xf32>
    %c0_22 = arith.constant 0 : index
    %c0_23 = arith.constant 0 : index
    %c0_24 = arith.constant 0 : index
    %60 = vector.load %arg6[%c0_22, %c0_23, %c0_24] : memref<1x8x128xf32, #tpu.memory_space<vmem>>, vector<1x8x128xf32>
    tpu.vector_store %arg6[%c0_22, %c0_23, %c0_24], %59 {strides = array<i32>} : memref<1x8x128xf32, #tpu.memory_space<vmem>>, vector<1x8x128xf32>,
    return
  }
  func.func @transform_0(%arg0: i32) -> (i32, i32) {
    %c0_i32 = arith.constant 0 : i32
    %c0_i32_0 = arith.constant 0 : i32
    return %arg0, %c0_i32 : i32, i32
  }
  func.func @transform_1(%arg0: i32) -> (i32, i32) {
    %c0_i32 = arith.constant 0 : i32
    %c0_i32_0 = arith.constant 0 : i32
    return %arg0, %c0_i32 : i32, i32
  }
  func.func @transform_2(%arg0: i32) -> (i32, i32) {
    %c0_i32 = arith.constant 0 : i32
    %c0_i32_0 = arith.constant 0 : i32
    return %arg0, %c0_i32 : i32, i32
  }
  func.func @transform_3(%arg0: i32) -> (i32, i32, i32) {
    %c0_i32 = arith.constant 0 : i32
    %c0_i32_0 = arith.constant 0 : i32
    %c0_i32_1 = arith.constant 0 : i32
    return %arg0, %c0_i32, %c0_i32_0 : i32, i32, i32
  }
  func.func @transform_4(%arg0: i32) -> (i32, i32, i32) {
    %c0_i32 = arith.constant 0 : i32
    %c0_i32_0 = arith.constant 0 : i32
    %c0_i32_1 = arith.constant 0 : i32
    return %arg0, %c0_i32, %c0_i32_0 : i32, i32, i32
  }
  func.func @transform_5(%arg0: i32) -> (i32, i32, i32) {
    %c0_i32 = arith.constant 0 : i32
    %c0_i32_0 = arith.constant 0 : i32
    %c0_i32_1 = arith.constant 0 : i32
    return %arg0, %c0_i32, %c0_i32_0 : i32, i32, i32
  }
}

</mosaic_0001>

<bundles_post_ra>
// kernel: tpu_custom_call.1
= control target key start
LH: loop header
LB: loop body
LE: loop exit
PB: predicated region body
PF: predicated region fallthrough
CT: control target
= control target key end

     0   :  { %11 = vsyncpa [#allocation3], 0  ;;  %s334_s0 = inlined_call_operand.hbm [shape: f32[8,128], index: 0, kind: input, shape index: {}]   ;;  %s335_s1 = inlined_call_operand.hbm [shape: f32[8,128], index: 1, kind: input, shape index: {}]   ;;  %s336_s2 = inlined_call_operand.hbm [shape: f32[8,128], index: 2, kind: input, shape index: {}]   ;;  %s337_s3 = inlined_call_operand.hbm [shape: f32[1,8,128], index: 3, kind: output, shape index: {0}]   ;;  %s338_s4 = inlined_call_operand.hbm [shape: f32[1,8,128], index: 4, kind: output, shape index: {1}]   ;;  %s339_s5 = inlined_call_operand.hbm [shape: f32[1,8,128], index: 5, kind: output, shape index: {2}]  }
   0x1   :  { %12 = vsyncpa [#allocation6], 0 }
   0x2   :  { %13 = vsyncpa [#allocation4], 0 }
   0x3   :  { %14 = vsyncpa [#allocation10], 0  ;;  %s276_s18 = smov [#allocation5]   ;;  %s277_s20 = smov [#allocation2]  }
   0x4   :  { %s31_s19 = sshll.u32 %s276_s18, 4  ;;  %s21_s21 = sshll.u32 %s277_s20, 4  ;;  %s32_s19 = int_to_ptr.vmem [resolvable:$true] %s31_s19  ;;  %s22_s21 = int_to_ptr.vmem [resolvable:$true] %s21_s21 }
   0x5   :  { %s156_s22 = scalar_lea.vmem %s32_s19, 128  ;;  %p161_p1 = scmp.lt.s32.totalorder %s32_s19, %s32_s19 }
   0x6   :  { %p157_p0 = scmp.ne.s32.totalorder %s32_s19, %s156_s22  ;;  %p162_p2 = scmp.lt.s32.totalorder %s156_s22, %s156_s22 }
   0x8   :  { %p163_p3 = por %p162_p2, %p161_p1 }
   0xa   :  { %p164_p4 = pnand %p163_p3, %p157_p0 }
   0xc   :  { %167 = shalt.err (!%p164_p4)
}
   0xd   :  { %34 = dma.hbm_to_vmem [thread:$0]  %s335_s1, 128, %s32_s19, [#allocation6]  }
   0xe   :  { %s176_s25 = scalar_lea.vmem %s22_s21, 128  ;;  %p181_p6 = scmp.lt.s32.totalorder %s22_s21, %s22_s21 }
   0xf   :  { %p177_p5 = scmp.ne.s32.totalorder %s22_s21, %s176_s25  ;;  %p182_p7 = scmp.lt.s32.totalorder %s176_s25, %s176_s25 }
  0x11   :  { %p183_p8 = por %p182_p7, %p181_p6 }
  0x13   :  { %p184_p9 = pnand %p183_p8, %p177_p5 }
  0x15   :  { %187 = shalt.err (!%p184_p9)
}
  0x16   :  { %24 = dma.hbm_to_vmem [thread:$0]  %s334_s0, 128, %s22_s21, [#allocation3]  }
  0x17   :  { %s278_s28 = smov [#allocation7]  }
  0x18   :  { %s41_s29 = sshll.u32 %s278_s28, 4  ;;  %s42_s29 = int_to_ptr.vmem [resolvable:$true] %s41_s29 }
  0x19   :  { %s196_s30 = scalar_lea.vmem %s42_s29, 128  ;;  %p201_p11 = scmp.lt.s32.totalorder %s42_s29, %s42_s29 }
  0x1a   :  { %p197_p10 = scmp.ne.s32.totalorder %s42_s29, %s196_s30  ;;  %p202_p12 = scmp.lt.s32.totalorder %s196_s30, %s196_s30 }
  0x1c   :  { %p203_p13 = por %p202_p12, %p201_p11 }
  0x1e   :  { %p204_p0 = pnand %p203_p13, %p197_p10 }
  0x20   :  { %207 = shalt.err (!%p204_p0)
}
  0x21   :  { %44 = dma.hbm_to_vmem [thread:$0]  %s336_s2, 128, %s42_s29, [#allocation6]  }
  0x22   :  { %268 = dma.done.wait [#allocation3], 128  }
  0x23   :  { %269 = vsyncadd [#allocation3], 4294967168 }
  0x24   :  { %270 = dma.done.wait [#allocation6], 256  }
  0x25   :  { %271 = vsyncadd [#allocation6], 4294967040  ;;  %v54_v0 = vlaneseq  ;;  %v61_v5 = vld [vmem:[#allocation2] sm:$0xff]  ;;  %v62_v6 = vld [vmem:[#allocation5] sm:$0xff]  ;;  %s279_s0 = smov [#allocation9]   ;;  %s280_s8 = smov [#allocation11]  }
  0x26   :  { %s109_s7 = sshll.u32 %s279_s0, 4  ;;  %vm67_vm1 = vcmp.eq.f32.partialorder %v62_v6, 1.0  ;;  %vm70_vm2 = vcmp.ge.f32.partialorder %v61_v5, 0.5  ;;  %144 = vlog2.f32 %v61_v5  ;;  %s119_s9 = sshll.u32 %s280_s8, 4  ;;  %v76_v7 = vsub.f32 1.0, %v61_v5  ;;  %s110_s7 = int_to_ptr.vmem [resolvable:$true] %s109_s7  ;;  %s120_s9 = int_to_ptr.vmem [resolvable:$true] %s119_s9 }
  0x27   :  { %v55_v1 = vshrl.u32 %v54_v0, 7  ;;  %v58_v2 = vand.u32 127, %v54_v0  ;;  %v281_v8 = vmov 0.0   ;;  %s208_s2 = scalar_lea.vmem %s110_s7, 128  ;;  %p213_p2 = scmp.lt.s32.totalorder %s110_s7, %s110_s7 }
  0x28   :  { %146 = vlog2.f32 %v76_v7  ;;  %p209_p1 = scmp.ne.s32.totalorder %s110_s7, %s208_s2  ;;  %p214_p3 = scmp.lt.s32.totalorder %s208_s2, %s208_s2 }
  0x29   :  { %v56_v3 = vmul.u32 128, %v55_v1 }
  0x2a   :  { %p215_p4 = por %p214_p3, %p213_p2 }
  0x2b   :  { %v59_v4 = vadd.s32 %v58_v2, %v56_v3 }
  0x2c   :  { %p216_p5 = pnand %p215_p4, %p209_p1 }
  0x2d   :  { %vm66_vm0 = vcmp.lt.s32.totalorder %v59_v4, 512 }
  0x2e   :  { %vm68_vm3 = vmand %vm66_vm0, %vm67_vm1 }
  0x2f   :  { %vm71_vm4 = vmand %vm68_vm3, %vm70_vm2  ;;  %v69_v9 = vsel %vm68_vm3, 1.0, %v281_v8 }
  0x30   :  { %v72_v10 = vsel %vm71_vm4, 1.0, %v281_v8  ;;  %92 = vst [vmem:[#allocation11] sm:$0xff] %v69_v9 }
  0x31   :  { %91 = vst [vmem:[#allocation9] sm:$0xff] %v72_v10 }
  0x32   :  { %219 = shalt.err (!%p216_p5)
}
  0x33   :  { %112 = dma.vmem_to_hbm [thread:$0]  %s110_s7, 128, %s338_s4, [#allocation10]  }
  0x34   :  { %s228_s12 = scalar_lea.vmem %s120_s9, 128  ;;  %p233_p7 = scmp.lt.s32.totalorder %s120_s9, %s120_s9 }
  0x35   :  { %p229_p6 = scmp.ne.s32.totalorder %s120_s9, %s228_s12  ;;  %p234_p8 = scmp.lt.s32.totalorder %s228_s12, %s228_s12 }
  0x37   :  { %p235_p9 = por %p234_p8, %p233_p7 }
  0x39   :  { %p236_p10 = pnand %p235_p9, %p229_p6 }
  0x3b   :  { %239 = shalt.err (!%p236_p10)
}
  0x3c   :  { %122 = dma.vmem_to_hbm [thread:$0]  %s120_s9, 128, %s339_s5, [#allocation10]   ;;  %v145_v11 = vpop.eup %144  ;;  %v63_v17 = vld [vmem:[#allocation7] sm:$0xff]  ;;  %v282_v20 = vmov -1.0  }
  0x3d   :  { %v74_v12 = vmul.f32 0.6931472, %v145_v11  ;;  %v147_v13 = vpop.eup %146  ;;  %vm80_vm5 = vcmp.gt.f32.partialorder %v63_v17, 0.5  ;;  %s283_s4 = smov [#allocation8]  }
  0x3e   :  { %v78_v15 = vmul.f32 0.6931472, %v147_v13  ;;  %v81_v21 = vsel %vm80_vm5, -10.0, %v282_v20  ;;  %s99_s15 = sshll.u32 %s283_s4, 4  ;;  %s100_s15 = int_to_ptr.vmem [resolvable:$true] %s99_s15 }
  0x3f   :  { %v75_v14 = vmax.f32 %v74_v12, -100.0  ;;  %s248_s5 = scalar_lea.vmem %s100_s15, 128  ;;  %p253_p12 = scmp.lt.s32.totalorder %s100_s15, %s100_s15 }
  0x40   :  { %v79_v16 = vmax.f32 %v78_v15, -100.0  ;;  %p249_p11 = scmp.ne.s32.totalorder %s100_s15, %s248_s5  ;;  %p254_p13 = scmp.lt.s32.totalorder %s248_s5, %s248_s5 }
  0x42   :  { %v82_v18 = vsub.f32 %v75_v14, %v79_v16  ;;  %p255_p0 = por %p254_p13, %p253_p12 }
  0x44   :  { %v83_v19 = vmul.f32 %v82_v18, %v63_v17  ;;  %p256_p1 = pnand %p255_p0, %p249_p11 }
  0x46   :  { %v84_v22 = vadd.f32 %v83_v19, %v79_v16 }
  0x48   :  { %v85_v23 = vmul.f32 %v84_v22, %v81_v21 }
  0x4a   :  { %v86_v24 = vsel %vm66_vm0, %v85_v23, 0.0 }
  0x4b   :  { %90 = vst [vmem:[#allocation8] sm:$0xff] %v86_v24 }
  0x4c   :  { %259 = shalt.err (!%p256_p1)
}
  0x4d   :  { %102 = dma.vmem_to_hbm [thread:$0]  %s100_s15, 128, %s337_s3, [#allocation4]  }
  0x4e   :  { %272 = dma.done.wait [#allocation4], 128  }
  0x4f   :  { %273 = vsyncadd [#allocation4], 4294967168 }
  0x50   :  { %274 = dma.done.wait [#allocation10], 256  }
  0x51   :  { %275 = vsyncadd [#allocation10], 4294967040 }
  0x52   :  { %132 = vsyncpa [#allocation3], 1 }
  0x53   :  { %133 = vsyncpa [#allocation6], 1 }
  0x54   :  { %134 = vsyncpa [#allocation4], 1 }
  0x55   :  { %135 = vsyncpa [#allocation10], 1 }

</bundles_post_ra>
